<compile_context>
chip_gen: v7x
topology: tpu7x:2x2x1
jax: 0.10.0
libtpu: 0.0.40
codegen_flags: <defaults>
</compile_context>

<pallas_src>
import jax
import jax.numpy as jnp
from jax import lax
from jax.experimental import pallas as pl
from jax.experimental.pallas import tpu as pltpu

LANES = 128           # vreg lane width
ROW_ALIGN = 32        # uint8 packs 4/sublane -> native (32, 128) tile
MAX_TILE_ROWS = 1024  # 1024 x 128 u8 = 128 KiB per block per buffer


def _plan_slab(n_elems):
    """Padded row count of the lane-dense u8 slab and the per-grid-step row tile."""
    rows = -(-n_elems // LANES)
    rows = -(-rows // ROW_ALIGN) * ROW_ALIGN
    if rows <= MAX_TILE_ROWS:
        return rows, rows
    padded_rows = -(-rows // MAX_TILE_ROWS) * MAX_TILE_ROWS
    return padded_rows, MAX_TILE_ROWS


def _to_slab(x_u8, padded_rows):
    """(B, C, H, W) uint8 -> (B, padded_rows, 128) uint8 (zero-padded tail)."""
    B = x_u8.shape[0]
    n = x_u8.shape[1] * x_u8.shape[2] * x_u8.shape[3]
    flat = x_u8.reshape(B, n)
    pad = padded_rows * LANES - n
    if pad:
        flat = jnp.pad(flat, ((0, 0), (0, pad)))
    return flat.reshape(B, padded_rows, LANES)


def _from_slab(slab_u8, chw):
    C, H, W = chw
    B = slab_u8.shape[0]
    return slab_u8.reshape(B, -1)[:, : C * H * W].reshape(B, C, H, W)


def _muldiv255_kernel(gates_ref, pids_ref, img_ref, pat_ref, out_ref):
    """Bit-exact PIL ImageChops.multiply (MULDIV255) with per-image gating.

    All refs are uint8 VMEM tiles; math runs on the int32 VALU path and the
    result is stored back as uint8 (4 elems per 32-bit lane).
    """
    b = pl.program_id(0)
    a = img_ref[...].astype(jnp.int32)
    p = pat_ref[...].astype(jnp.int32)
    t = a * p + 128
    comb = (t + (t >> 8)) >> 8              # exact MULDIV255
    gate = gates_ref[b]                     # 1 -> apply pattern, 0 -> identity
    out_ref[...] = jnp.where(gate != 0, comb, a).astype(jnp.uint8)


def multiply_blend_batch(imgs_u8, patterns_slab, gates, pids, tile_rows):
    """imgs_u8: (B,C,H,W) u8; patterns_slab: (P, rows, 128) u8;
    gates/pids: (B,) int32.  Returns (B,C,H,W) u8."""
    B, C, H, W = imgs_u8.shape
    P, padded_rows, lanes = patterns_slab.shape
    assert lanes == LANES and padded_rows % tile_rows == 0

    imgs_slab = _to_slab(imgs_u8, padded_rows)
    gates = gates.astype(jnp.int32)
    pids = pids.astype(jnp.int32)

    out_slab = pl.pallas_call(
        _muldiv255_kernel,
        out_shape=jax.ShapeDtypeStruct((B, padded_rows, LANES), jnp.uint8),
        grid_spec=pltpu.PrefetchScalarGridSpec(
            num_scalar_prefetch=2,               # gates, pids land in SMEM
            grid=(B, padded_rows // tile_rows),
            in_specs=[
                # image tile for (batch b, row-tile t)
                pl.BlockSpec((1, tile_rows, LANES), lambda b, t, g, pid: (b, t, 0)),
                # pattern tile chosen by the prefetched pid (no host sync/gather)
                pl.BlockSpec((1, tile_rows, LANES), lambda b, t, g, pid: (pid[b], t, 0)),
            ],
            out_specs=pl.BlockSpec((1, tile_rows, LANES), lambda b, t, g, pid: (b, t, 0)),
        ),
        compiler_params=pltpu.CompilerParams(
            # every grid point writes a distinct output block -> shard across
            # v7x's 2 TensorCores; harmless no-op on single-TC v5e/v6e.
            dimension_semantics=("parallel", "parallel"),
        ),
    )(gates, pids, imgs_slab, patterns_slab)

    return _from_slab(out_slab, (C, H, W))


class RandomSyntheticPatternPallas:
    """JAX/Pallas re-implementation of RandomSyntheticPattern's forward pass."""

    def __init__(self, img_size, key):
        self.p = 0.2
        self.img_size = img_size
        # TODO(synk): ./dataset/patterns/{d}x.jpg loading and the PIL geometric
        # warps (RandomAffine / RandomPerspective) have no Pallas equivalent;
        # deterministic synthetic patterns + a static CenterCrop stand in.
        densities = [1, 2, 4, 8, 9, 10, 11, 12, 13, 16, 17]
        big = img_size + 8
        yy = jnp.arange(big, dtype=jnp.float32)[:, None]
        xx = jnp.arange(big, dtype=jnp.float32)[None, :]
        pats = []
        for i, d in enumerate(densities):
            k = jax.random.fold_in(key, i)
            base = (jnp.sin(yy * d * 0.5) * jnp.sin(xx * d * 0.5)) * 0.5 + 0.5
            noise = jax.random.uniform(k, (big, big)) * 0.2
            p = jnp.clip(base * 0.8 + noise, 0.0, 1.0) * 255.0
            pats.append(jnp.broadcast_to(p[None], (3, big, big)).astype(jnp.uint8))
        pats = jnp.stack(pats)                                  # (P, 3, big, big) u8

        # CenterCrop once (static offsets) + pre-flatten to kernel-ready slab.
        off = (big - img_size) // 2
        self.patterns_chw = pats[:, :, off:off + img_size, off:off + img_size]
        n_elems = 3 * img_size * img_size
        self.padded_rows, self.tile_rows = _plan_slab(n_elems)
        self.patterns_slab = _to_slab(self.patterns_chw, self.padded_rows)
        self.n_patterns = len(densities)

    def apply_batch(self, imgs_u8, gates, pids):
        """Batched blend: one pallas_call for a whole stack of images."""
        return multiply_blend_batch(imgs_u8, self.patterns_slab, gates, pids,
                                    self.tile_rows)

    def __call__(self, img_u8, key):
        """Single-image forward matching the PyTorch module's semantics."""
        k_gate, k_pick = jax.random.split(key)
        u = jax.random.uniform(k_gate, ())
        # torch: `if self.p < rand: return img`  =>  apply pattern iff u <= p
        # (differs only on the measure-zero equality case)
        gate = u <= self.p
        pid = jax.random.randint(k_pick, (1,), 0, self.n_patterns, dtype=jnp.int32)

        def _blend(img):
            out = multiply_blend_batch(img[None], self.patterns_slab,
                                       jnp.ones((1,), jnp.int32), pid,
                                       self.tile_rows)
            return out[0]

        # 80% of calls skip the kernel (pattern DMA, compute, writeback) entirely.
        return lax.cond(gate, _blend, lambda img: img, img_u8)


def _muldiv255_ref(img_u8, pat_u8, gate):
    """Plain-JAX reference: exact PIL MULDIV255 with gating."""
    t = img_u8.astype(jnp.int32) * pat_u8.astype(jnp.int32) + 128
    comb = ((t + (t >> 8)) >> 8).astype(jnp.uint8)
    return jnp.where(gate != 0, comb, img_u8)


if __name__ == "__main__":
    key = jax.random.PRNGKey(0)
    k_init, k_img, k_fwd = jax.random.split(key, 3)

    img_size = 16
    batch = 2
    module = RandomSyntheticPatternPallas(img_size, k_init)

    # deterministic example images, (B, C, H, W) uint8
    imgs = jax.random.randint(k_img, (batch, 3, img_size, img_size), 0, 256,
                              dtype=jnp.int32).astype(jnp.uint8)

    # 1) batched kernel path (guaranteed to execute the Pallas kernel)
    gates = jnp.array([1, 0], dtype=jnp.int32)
    pids = jnp.array([0, 3], dtype=jnp.int32)
    out_b = jax.block_until_ready(module.apply_batch(imgs, gates, pids))
    assert out_b.shape == imgs.shape and out_b.dtype == jnp.uint8

    # correctness vs plain-JAX MULDIV255 reference
    ref = jnp.stack([
        _muldiv255_ref(imgs[i], module.patterns_chw[pids[i]], gates[i])
        for i in range(batch)
    ])
    assert bool(jnp.array_equal(out_b, ref)), "mismatch vs MULDIV255 reference"

    # 2) single-image stochastic forward (lax.cond gate; jittable end to end)
    out1 = jax.block_until_ready(jax.jit(module.__call__)(imgs[0], k_fwd))
    assert out1.shape == (3, img_size, img_size) and out1.dtype == jnp.uint8

    print("KERNEL_OK")
</pallas_src>

<mosaic_0001>
module attributes {stable_mosaic.version = 11 : i64} {
  func.func @_muldiv255_kernel(%arg0: i32, %arg1: i32, %arg2: memref<2xi32, #tpu.memory_space<smem>>, %arg3: memref<2xi32, #tpu.memory_space<smem>>, %arg4: memref<1x32x128xi8, #tpu.memory_space<vmem>>, %arg5: memref<1x32x128xi8, #tpu.memory_space<vmem>>, %arg6: memref<1x32x128xi8, #tpu.memory_space<vmem>>) attributes {dimension_semantics = [#tpu.dimension_semantics<parallel>, #tpu.dimension_semantics<parallel>], iteration_bounds = array<i64: 2, 1>, scalar_prefetch = 2 : i64, scratch_operands = 0 : i64, tpu.core_type = #tpu.core_type<tc>, window_params = [{transform_indices = @transform_0, window_bounds = array<i64: 1, 32, 128>}, {transform_indices = @transform_1, window_bounds = array<i64: 1, 32, 128>}, {transform_indices = @transform_2, window_bounds = array<i64: 1, 32, 128>}]} {
    %c0 = arith.constant 0 : index
    %c0_0 = arith.constant 0 : index
    %c0_1 = arith.constant 0 : index
    %0 = vector.load %arg4[%c0, %c0_0, %c0_1] : memref<1x32x128xi8, #tpu.memory_space<vmem>>, vector<1x32x128xi8>
    %1 = arith.extui %0 : vector<1x32x128xi8> to vector<1x32x128xi32>
    %c0_2 = arith.constant 0 : index
    %c0_3 = arith.constant 0 : index
    %c0_4 = arith.constant 0 : index
    %2 = vector.load %arg5[%c0_2, %c0_3, %c0_4] : memref<1x32x128xi8, #tpu.memory_space<vmem>>, vector<1x32x128xi8>
    %3 = arith.extui %2 : vector<1x32x128xi8> to vector<1x32x128xi32>
    %4 = arith.muli %1, %3 : vector<1x32x128xi32>
    %c128_i32 = arith.constant 128 : i32
    %5 = vector.broadcast %c128_i32 : i32 to vector<1x32x128xi32>
    %6 = arith.addi %4, %5 : vector<1x32x128xi32>
    %c8_i32 = arith.constant 8 : i32
    %7 = vector.broadcast %c8_i32 : i32 to vector<1x32x128xi32>
    %8 = arith.shrsi %6, %7 : vector<1x32x128xi32>
    %9 = arith.addi %6, %8 : vector<1x32x128xi32>
    %c8_i32_5 = arith.constant 8 : i32
    %10 = vector.broadcast %c8_i32_5 : i32 to vector<1x32x128xi32>
    %11 = arith.shrsi %9, %10 : vector<1x32x128xi32>
    %12 = arith.index_cast %arg0 : i32 to index
    %13 = memref.load %arg2[%12] : memref<2xi32, #tpu.memory_space<smem>>
    %c0_i32 = arith.constant 0 : i32
    %14 = arith.cmpi ne, %13, %c0_i32 : i32
    %15 = arith.select %14, %11, %1 : vector<1x32x128xi32>
    %16 = arith.trunci %15 : vector<1x32x128xi32> to vector<1x32x128xi8>
    %c0_6 = arith.constant 0 : index
    %c0_7 = arith.constant 0 : index
    %c0_8 = arith.constant 0 : index
    %17 = vector.load %arg6[%c0_6, %c0_7, %c0_8] : memref<1x32x128xi8, #tpu.memory_space<vmem>>, vector<1x32x128xi8>
    tpu.vector_store %arg6[%c0_6, %c0_7, %c0_8], %16 {strides = array<i32>} : memref<1x32x128xi8, #tpu.memory_space<vmem>>, vector<1x32x128xi8>,
    return
  }
  func.func @transform_0(%arg0: i32, %arg1: i32, %arg2: memref<2xi32, #tpu.memory_space<smem>>, %arg3: memref<2xi32, #tpu.memory_space<smem>>) -> (i32, i32, i32) {
    %c0_i32 = arith.constant 0 : i32
    %c0_i32_0 = arith.constant 0 : i32
    return %arg0, %arg1, %c0_i32 : i32, i32, i32
  }
  func.func @transform_1(%arg0: i32, %arg1: i32, %arg2: memref<2xi32, #tpu.memory_space<smem>>, %arg3: memref<2xi32, #tpu.memory_space<smem>>) -> (i32, i32, i32) {
    %0 = arith.index_cast %arg0 : i32 to index
    %1 = memref.load %arg3[%0] : memref<2xi32, #tpu.memory_space<smem>>
    %c0_i32 = arith.constant 0 : i32
    %c0_i32_0 = arith.constant 0 : i32
    return %1, %arg1, %c0_i32 : i32, i32, i32
  }
  func.func @transform_2(%arg0: i32, %arg1: i32, %arg2: memref<2xi32, #tpu.memory_space<smem>>, %arg3: memref<2xi32, #tpu.memory_space<smem>>) -> (i32, i32, i32) {
    %c0_i32 = arith.constant 0 : i32
    %c0_i32_0 = arith.constant 0 : i32
    return %arg0, %arg1, %c0_i32 : i32, i32, i32
  }
}

</mosaic_0001>

<bundles_post_ra>
// kernel: tpu_custom_call.1
= control target key start
LH: loop header
LB: loop body
LE: loop exit
PB: predicated region body
PF: predicated region fallthrough
CT: control target
= control target key end

     0   :  { %s1056_s0 = inlined_call_operand.hbm [shape: s32[2], index: 0, kind: input, shape index: {}]   ;;  %s1057_s2 = inlined_call_operand.hbm [shape: u8[2,32,128], index: 2, kind: input, shape index: {}]   ;;  %s1058_s3 = inlined_call_operand.hbm [shape: u8[11,32,128], index: 3, kind: input, shape index: {}]   ;;  %s1059_s4 = inlined_call_operand.hbm [shape: u8[2,32,128], index: 4, kind: output, shape index: {}]   ;;  %s1060_s1 = inlined_call_operand.vmem [shape: s32[2], index: 1, kind: input, shape index: {}]  }
   0x1   :  { %1067 = sst [smem:[#allocation18_spill]] %s1057_s2  ;;  %s513_s17 = scalar_lea.hbm %s1056_s0, 16 }
   0x2   :  { %p514_p0 = scmp.ne.s32.totalorder %s1056_s0, %s513_s17  ;;  %p517_p1 = scmp.lt.u32.totalorder %s513_s17, %s1056_s0 }
   0x4   :  { %p519_p2 = pnand %p517_p1, %p514_p0 }
   0x6   :  { %522 = shalt.err (!%p519_p2)  }
   0x7   :  { %s709_s22 = smov [#allocation3]   ;;  %s11_s27 = sshll.u32 %s1060_s1, 4  ;;  %s12_s27 = int_to_ptr.vmem [resolvable:$true] %s11_s27 }
   0x8   :  { %10 = dma.hbm_to_smem %s1056_s0, 16, %s709_s22, [#allocation2] }
   0x9   :  { %s523_s28 = scalar_lea.vmem %s12_s27, 16  ;;  %p528_p4 = scmp.lt.s32.totalorder %s12_s27, %s12_s27 }
   0xa   :  { %p524_p3 = scmp.ne.s32.totalorder %s12_s27, %s523_s28  ;;  %p529_p5 = scmp.lt.s32.totalorder %s523_s28, %s523_s28 }
   0xc   :  { %p530_p6 = por %p529_p5, %p528_p4 }
   0xe   :  { %p531_p7 = pnand %p530_p6, %p524_p3 }
  0x10   :  { %534 = shalt.err (!%p531_p7)  }
  0x11   :  { %s710_s29 = smov [#allocation4]  }
  0x12   :  { %14 = dma.vmem_to_smem %s12_s27, 16, %s710_s29, [#allocation2] }
  0x13   :  { %659 = dma.done.wait [#allocation2], 32 }
  0x14   :  { %660 = vsyncadd [#allocation2], 4294967264 }
  0x15   :  { %16 = sfence }
  0x16   :  { %17 = vsyncpa [#allocation6], 0 }
  0x17   :  { %19 = vsyncpa [#allocation6 + $0x1], 0 }
  0x18   :  { %20 = vsyncpa [#allocation9], 0 }
  0x19   :  { %22 = vsyncpa [#allocation9 + $0x1], 0 }
  0x1a   :  { %23 = vsyncpa [#allocation7], 0 }
  0x1b   :  { %25 = vsyncpa [#allocation7 + $0x1], 0  ;;  %s754_s0 = smov 0   ;;  %s756_s1 = smov 0  }
  0x1c   :  { %s758_s30 = smov 0   ;;  %s760_s5 = smov 0  }
  0x1d   :  { %s762_s6 = smov 0   ;;  %s764_s7 = smov 0  }
  0x1e   :  { %s766_s8 = smov 0   ;;  %s768_s9 = smov 0  }
  0x1f   :  { %s770_s10 = smov 0  }
  0x20 LB: > { %s400_s11 = sadd.s32 4294967295, %s707_s10   ;;  %s401_s12 = sadd.s32 4294967294, %s707_s10   ;;  %s707_s10 = sphi %s770_s10, %s31_s10   ;;  %s703_s9 = sphi %s768_s9, %s1098_s9   ;;  %s699_s8 = sphi %s766_s8, %s1097_s8   ;;  %s695_s7 = sphi %s764_s7, %s1096_s7   ;;  %s691_s6 = sphi %s762_s6, %s1095_s6   ;;  %s687_s5 = sphi %s760_s5, %s1094_s5   ;;  %s683_s30 = sphi %s758_s30, %s1093_s30   ;;  %s679_s1 = sphi %s756_s1, %s1092_s1   ;;  %s675_s0 = sphi %s754_s0, %s1091_s0  }
  0x21   : > { %s43_s13 = sadd.s32 1, %s703_s9  ;;  %s52_s14 = sadd.s32 1, %s695_s7 }
  0x22   : > { %p45_p8 = scmp.ge.s32.totalorder %s43_s13, 2  ;;  %p59_p9 = scmp.ne.s32.totalorder %s695_s7, %s691_s6 }
  0x23   : > { %p1062_p10 = scmp.eq.s32.totalorder %s707_s10, 0  ;;  %p65_p11 = scmp.ne.s32.totalorder %s691_s6, %s687_s5 }
  0x24   : > { %s1100_s13 = smov (%p45_p8, %s43_s13), 0  ;;  %p819_p13 = scmp.eq.s32.totalorder %s400_s11, 0 }
  0x25   : > { %1068 = sst [smem:[#allocation17_spill]] %s1100_s13  ;;  %p815_p12 = por %p1062_p10, %p59_p9 }
  0x26   : > { %s47_s17 = ssub.s32 %s703_s9, %s1100_s13  ;;  %s826_s18 = sld [smem:[#allocation4 + %s703_s9]] }
  0x27   : > { %p50_p0 = scmp.eq.s32.totalorder %s47_s17, 0  ;;  %p833_p1 = por %p819_p13, %p65_p11 }
  0x28   : > { %s838_s20 = sld [smem:[#allocation4 + %s1100_s13]]  ;;  %p121_p2 = scmp.eq.s32.totalorder %s400_s11, 1 }
  0x29   : > { %s1071_s19 = scalar_select %p833_p1, 1, 0 }
  0x2a   : > { %s841_s21 = scalar_select %p50_p0, %s695_s7, %s52_s14  }
  0x2b   : > { %p846_p3 = por %p121_p2, %p59_p9  ;;  %p127_p4 = scmp.eq.s32.totalorder %s401_s12, 1 }
  0x2c   : > { %p1061_p6 = scmp.lt.s32.totalorder %s707_s10, 2  ;;  %s147_s24 = sand.u32 1, %s695_s7  }
  0x2d   : > { %s1072_s22 = scalar_select %p846_p3, 1, 0 }
  0x2e   : > { %p855_p7 = por %p127_p4, %p65_p11  ;;  %s404_s25 = sshll.u32 %s147_s24, 3 }
  0x2f   : > { %s405_s26 = sshll.u32 %s703_s9, 7  ;;  %s1074_s2 = sld [smem:[#allocation18_spill]] }
  0x30   : > { %s1073_s23 = scalar_select %p855_p7, 1, 0 }
  0x31   : > { %s151_s11 = scalar_lea.vmem [#allocation5], %s404_s25  ;;  %p872_p8 = pnand %p1061_p6, %p815_p12 }
  0x32   : > { %s159_s12 = sshll.u32 %s151_s11, 4  ;;  %s148_s17 = scalar_lea.sflag [#allocation6], %s147_s24  ;;  %s866_s12 = int_to_ptr.vmem [resolvable:$true] %s159_s12 }
  0x33   : > { %p537_p2 = pneg %p872_p8 }
  0x35   : > { %s864_s29 = scalar_lea.hbm %s1074_s2, %s405_s26  ;;  %s540_s27 = scalar_lea.hbm %s1074_s2, 256 }
  0x36   : > { %s535_s26 = scalar_lea.hbm %s864_s29, 128  ;;  %p541_p12 = scmp.lt.u32.totalorder %s864_s29, %s1074_s2 }
  0x37   : > { %p536_p0 = scmp.ne.s32.totalorder %s864_s29, %s535_s26  ;;  %p542_p6 = scmp.lt.u32.totalorder %s540_s27, %s535_s26 }
  0x38   : > { %p544_p9 = scmp.lt.u32.totalorder %s535_s26, %s864_s29 }
  0x39   : > { %p538_p4 = pnand %p537_p2, %p536_p0  ;;  %p543_p10 = por %p542_p6, %p541_p12 }
  0x3b   : > { %p539_p5 = pneg %p538_p4  ;;  %p545_p11 = por %p544_p9, %p543_p10 }
  0x3d   : > { %p546_p7 = pnand %p545_p11, %p539_p5 }
  0x3f   : > { %549 = shalt.err (!%p546_p7)
}
  0x40   : > { %s550_s24 = scalar_lea.vmem %s866_s12, 128  ;;  %s711_s25 = smov [#allocation5]  }
  0x41   : > { %p551_p0 = scmp.ne.s32.totalorder %s866_s12, %s550_s24  ;;  %s555_s15 = sshll.u32 %s711_s25, 4  ;;  %s556_s15 = int_to_ptr.vmem [resolvable:$false] %s555_s15 }
  0x42   : > { %s557_s28 = scalar_lea.vmem %s556_s15, 256  ;;  %p558_p1 = scmp.lt.s32.totalorder %s866_s12, %s556_s15 }
  0x43   : > { %p553_p4 = pnand %p551_p0, %p537_p2  ;;  %p559_p6 = scmp.lt.s32.totalorder %s557_s28, %s550_s24 }
  0x45   : > { %p554_p3 = pneg %p553_p4  ;;  %p560_p12 = por %p559_p6, %p558_p1 }
  0x47   : > { %p561_p10 = pnand %p560_p12, %p554_p3 }
  0x49   : > { %564 = shalt.err (!%p561_p10)
}
  0x4a   : > { %427 = dma.hbm_to_vmem [thread:$0]  (!%p872_p8), %s864_s29, 128, %s866_s12, %s148_s17  }
  0x4b   : > { %p1076_p1 = scmp.lt.s32.totalorder %s707_s10, 3  ;;  %p1077_p3 = scmp.ge.s32.totalorder %s707_s10, 1 }
  0x4c   : > { %s77_s26 = ssub.s32 %s826_s18, %s838_s20  ;;  %s82_s27 = sadd.s32 1, %s683_s30 }
  0x4d   : > { %p907_p5 = pnand %p1077_p3, %p1076_p1  ;;  %p80_p7 = scmp.eq.s32.totalorder %s77_s26, 0 }
  0x4e   : > { %p89_p9 = scmp.ne.s32.totalorder %s683_s30, %s679_s1  ;;  %p95_p11 = scmp.ne.s32.totalorder %s679_s1, %s675_s0 }
  0x4f   : > { %s166_s11 = sand.u32 1, %s683_s30   ;;  %p1079_p2 = scmp.eq.s32.totalorder %s707_s10, 0 }
  0x50   : > { %s920_s24 = scalar_select %p80_p7, %s683_s30, %s82_s27  }
  0x51   : > { %p91_p0 = por %p89_p9, %p1079_p2  ;;  %p926_p4 = por %p95_p11, %p819_p13 }
  0x52   : > { %s406_s12 = sshll.u32 %s166_s11, 3  ;;  %p1081_p8 = scmp.lt.s32.totalorder %s707_s10, 2 }
  0x53   : > { %s1080_s29 = scalar_select %p926_p4, 1, 0 }
  0x54   : > { %p932_p6 = pnand %p1081_p8, %p91_p0  ;;  %p1083_p12 = pmov %p1081_p8 }
  0x55   : > { %s417_s18 = scalar_select %p91_p0, [#allocation4], [#allocation11] }
  0x56   : > { %s418_s0 = scalar_select %p91_p0, %s703_s9, 0 }
  0x57   : > { %s1102_s18 = smov (!%p1083_p12, %s417_s18), [#allocation12]  ;;  %p1084_p10 = pmov %p1081_p8 }
  0x58   : > { %s170_s16 = scalar_lea.vmem [#allocation8], %s406_s12  ;;  %s167_s2 = scalar_lea.sflag [#allocation9], %s166_s11 }
  0x59   : > { %s1104_s0 = smov (!%p1084_p10, %s418_s0), 0  ;;  %s179_s25 = sshll.u32 %s170_s16, 4  ;;  %s941_s25 = int_to_ptr.vmem [resolvable:$true] %s179_s25 }
  0x5a   : > { %s171_s20 = sld [smem:[%s1102_s18 + %s1104_s0]]  ;;  %p567_p1 = pneg %p932_p6 }
  0x5b   : > { %s570_s0 = scalar_lea.hbm %s1058_s3, 1408 }
  0x60   : > { %s407_s15 = sshll.u32 %s171_s20, 7 }
  0x61   : > { %s946_s27 = scalar_lea.hbm %s1058_s3, %s407_s15 }
  0x62   : > { %s565_s13 = scalar_lea.hbm %s946_s27, 128  ;;  %p571_p9 = scmp.lt.u32.totalorder %s946_s27, %s1058_s3 }
  0x63   : > { %p566_p13 = scmp.ne.s32.totalorder %s946_s27, %s565_s13  ;;  %p572_p11 = scmp.lt.u32.totalorder %s570_s0, %s565_s13 }
  0x64   : > { %p574_p0 = scmp.lt.u32.totalorder %s565_s13, %s946_s27 }
  0x65   : > { %p568_p3 = pnand %p567_p1, %p566_p13  ;;  %p573_p2 = por %p572_p11, %p571_p9 }
  0x67   : > { %p569_p7 = pneg %p568_p3  ;;  %p575_p8 = por %p574_p0, %p573_p2 }
  0x69   : > { %p576_p12 = pnand %p575_p8, %p569_p7 }
  0x6b   : > { %579 = shalt.err (!%p576_p12)
}
  0x6c   : > { %s580_s11 = scalar_lea.vmem %s941_s25, 128  ;;  %s712_s15 = smov [#allocation8]  }
  0x6d   : > { %p581_p10 = scmp.ne.s32.totalorder %s941_s25, %s580_s11  ;;  %s585_s28 = sshll.u32 %s712_s15, 4  ;;  %s586_s28 = int_to_ptr.vmem [resolvable:$false] %s585_s28 }
  0x6e   : > { %s587_s26 = scalar_lea.vmem %s586_s28, 256  ;;  %p588_p4 = scmp.lt.s32.totalorder %s941_s25, %s586_s28 }
  0x6f   : > { %p583_p13 = pnand %p581_p10, %p567_p1  ;;  %p589_p9 = scmp.lt.s32.totalorder %s587_s26, %s580_s11 }
  0x71   : > { %p584_p3 = pneg %p583_p13  ;;  %p590_p11 = por %p589_p9, %p588_p4 }
  0x73   : > { %p591_p2 = pnand %p590_p11, %p584_p3 }
  0x75   : > { %594 = shalt.err (!%p591_p2)
}
  0x76   : > { %432 = dma.hbm_to_vmem [thread:$0]  (!%p932_p6), %s946_s27, 128, %s941_s25, %s167_s2  }
  0x77   : > { %188 = sbr.rel (%p907_p5) target bundleno = 167 (0xa7), region = 28  ;;  %s976_s13 = sand.u32 (!%p907_p5), 1, %s691_s6  }
  0x78   : > { %s409_s12 = sshll.u32 (!%p907_p5), %s976_s13, 3  ;;  %s191_s18 = scalar_lea.sflag (!%p907_p5), [#allocation6], %s976_s13 }
  0x79   : > { %s194_s0 = scalar_lea.vmem (!%p907_p5), [#allocation5], %s409_s12  ;;  %p1085_p4 = scmp.ne.s32.totalorder (!%p907_p5), %s1071_s19, 0 }
  0x7e   : > { %662 = dma.done.wait (%p1085_p4), %s191_s18, 128  }
  0x7f   : > { %664 = vsyncadd (%p1085_p4), %s191_s18, 4294967168  ;;  %s199_s2 = sand.u32 1, %s679_s1   ;;  %p1086_p5 = scmp.ne.s32.totalorder %s1080_s29, 0 }
  0x80   : > { %s410_s14 = sshll.u32 %s199_s2, 3  ;;  %s200_s17 = scalar_lea.sflag [#allocation9], %s199_s2 }
  0x81   : > { %s203_s25 = scalar_lea.vmem [#allocation8], %s410_s14 }
  0x82   : > { %666 = dma.done.wait (%p1086_p5), %s200_s17, 128  }
  0x83   : > { %668 = vsyncadd (%p1086_p5), %s200_s17, 4294967168  ;;  %s268_s27 = sld [smem:[#allocation3 + %s699_s8]]  ;;  %v230_v0 = vld [vmem:[%s194_s0] sm:$0xff]  ;;  %v239_v1 = vld [vmem:[%s203_s25] sm:$0xff]  ;;  %s228_s29 = scalar_lea.vmem [#allocation10], %s409_s12 }
  0x84   : > { %v231_v2 = vunpack.c.0.s8 %v230_v0  ;;  %v232_v3 = vunpack.c.1.s8 %v230_v0  ;;  %v233_v4 = vunpack.c.2.s8 %v230_v0  ;;  %v234_v5 = vunpack.c.3.s8 %v230_v0  ;;  %s296_s20 = sshll.u32 %s228_s29, 4  ;;  %s413_s16 = sshll.u32 %s699_s8, 7  ;;  %s995_s20 = int_to_ptr.vmem [resolvable:$true] %s296_s20 }
  0x85   : > { %v240_v6 = vunpack.c.0.s8 %v239_v1  ;;  %v241_v7 = vunpack.c.1.s8 %v239_v1  ;;  %v242_v8 = vunpack.c.2.s8 %v239_v1  ;;  %v243_v9 = vunpack.c.3.s8 %v239_v1  ;;  %s1000_s28 = scalar_lea.hbm %s1059_s4, %s413_s16  ;;  %s282_s26 = scalar_lea.sflag [#allocation7], %s976_s13 }
  0x86   : > { %v235_v10 = vand.u32 255, %v231_v2  ;;  %v236_v11 = vand.u32 255, %v232_v3  ;;  %v237_v12 = vand.u32 255, %v233_v4  ;;  %v238_v13 = vand.u32 255, %v234_v5  ;;  %s595_s18 = scalar_lea.vmem %s995_s20, 128  ;;  %p1087_p7 = scmp.ne.s32.totalorder %s1072_s22, 0 }
  0x87   : > { %v244_v14 = vand.u32 255, %v240_v6  ;;  %v245_v15 = vand.u32 255, %v241_v7  ;;  %v246_v16 = vand.u32 255, %v242_v8  ;;  %v247_v17 = vand.u32 255, %v243_v9  ;;  %p596_p1 = scmp.ne.s32.totalorder %s995_s20, %s595_s18  ;;  %s713_s8 = smov [#allocation10]  }
  0x88   : > { %s599_s12 = sshll.u32 %s713_s8, 4  ;;  %s600_s12 = int_to_ptr.vmem [resolvable:$false] %s599_s12 }
  0x89   : > { %p269_p6 = scmp.ne.s32.totalorder %s268_s27, 0  ;;  %v248_v18 = vmul.u32 %v244_v14, %v235_v10  ;;  %v249_v19 = vmul.u32 %v245_v15, %v236_v11  ;;  %p597_p0 = pnand %p596_p1, %p1087_p7 }
  0x8a   : > { %v250_v20 = vmul.u32 %v246_v16, %v237_v12  ;;  %v251_v21 = vmul.u32 %v247_v17, %v238_v13  ;;  %s601_s0 = scalar_lea.vmem %s600_s12, 256  ;;  %p602_p12 = scmp.lt.s32.totalorder %s995_s20, %s600_s12 }
  0x8b   : > { %s270_s19 = scalar_select %p269_p6, 1, 0  ;;  %v252_v22 = vadd.s32 128, %v248_v18  ;;  %v253_v23 = vadd.s32 128, %v249_v19 }
  0x8c   : > { %v254_v24 = vadd.s32 128, %v250_v20  ;;  %v255_v25 = vadd.s32 128, %v251_v21  ;;  %p598_p8 = pneg %p597_p0  ;;  %p603_p10 = scmp.lt.s32.totalorder %s601_s0, %s595_s18 }
  0x8d   : > { %v271_v26 = vstv %s270_s19  ;;  %v256_v27 = vshra.s32 %v252_v22, 8  ;;  %v257_v28 = vshra.s32 %v253_v23, 8 }
  0x8e   : > { %v258_v29 = vshra.s32 %v254_v24, 8  ;;  %v259_v30 = vshra.s32 %v255_v25, 8  ;;  %vm272_vm0 = vcmp.eq.s32.totalorder %v271_v26, 1  ;;  %p604_p13 = por %p603_p10, %p602_p12 }
  0x8f   : > { %v260_v31 = vadd.s32 %v256_v27, %v252_v22  ;;  %v261_v32 = vadd.s32 %v257_v28, %v253_v23 }
  0x90   : > { %v262_v33 = vadd.s32 %v258_v29, %v254_v24  ;;  %v263_v34 = vadd.s32 %v259_v30, %v255_v25  ;;  %p605_p3 = pnand %p604_p13, %p598_p8 }
  0x91   : > { %v264_v35 = vshra.s32 %v260_v31, 8  ;;  %v265_v36 = vshra.s32 %v261_v32, 8 }
  0x92   : > { %v266_v37 = vshra.s32 %v262_v33, 8  ;;  %v267_v38 = vshra.s32 %v263_v34, 8 }
  0x93   : > { %v273_v39 = vsel %vm272_vm0, %v264_v35, %v235_v10  ;;  %v274_v40 = vsel %vm272_vm0, %v265_v36, %v236_v11 }
  0x94   : > { %v275_v41 = vsel %vm272_vm0, %v266_v37, %v237_v12  ;;  %v276_v42 = vsel %vm272_vm0, %v267_v38, %v238_v13  ;;  %v277_v43 = vpack.c.b16 %v274_v40, %v273_v39 }
  0x95   : > { %v278_v44 = vpack.c.b16 %v276_v42, %v275_v41 }
  0x97   : > { %v279_v45 = vpack.c.b8 %v278_v44, %v277_v43 }
  0x99   : > { %280 = vst [vmem:[%s228_s29] sm:$0xff] %v279_v45 }
  0x9a   : > { %608 = shalt.err (!%p605_p3)
}
  0x9b   : > { %s609_s13 = scalar_lea.hbm %s1000_s28, 128  ;;  %s613_s17 = scalar_lea.hbm %s1059_s4, 256 }
  0x9c   : > { %p610_p9 = scmp.ne.s32.totalorder %s1000_s28, %s609_s13  ;;  %p614_p4 = scmp.lt.u32.totalorder %s1000_s28, %s1059_s4 }
  0x9d   : > { %p615_p5 = scmp.lt.u32.totalorder %s613_s17, %s609_s13  ;;  %p617_p1 = scmp.lt.u32.totalorder %s609_s13, %s1000_s28 }
  0x9e   : > { %p611_p11 = pnand %p610_p9, %p1087_p7 }
  0x9f   : > { %p616_p6 = por %p615_p5, %p614_p4 }
  0xa0   : > { %p612_p2 = pneg %p611_p11 }
  0xa1   : > { %p618_p0 = por %p617_p1, %p616_p6 }
  0xa3   : > { %p619_p8 = pnand %p618_p0, %p612_p2 }
  0xa5   : > { %622 = shalt.err (!%p619_p8)
}
  0xa6   : > { %422 = dma.vmem_to_hbm [thread:$0]  (%p1087_p7), %s995_s20, 128, %s1000_s28, %s282_s26  }
  0xa7 PF: > { %s308_s19 = sand.u32 1, %s687_s5   ;;  %p1088_p12 = scmp.ne.s32.totalorder %s1073_s23, 0 }
  0xa8   : > { %p1089_p10 = scmp.ge.s32.totalorder %s707_s10, 2  ;;  %s309_s29 = scalar_lea.sflag [#allocation7], %s308_s19 }
  0xaa   : > { %p434_p13 = pnand %p1089_p10, %p1088_p12 }
  0xac   : > { %670 = dma.done.wait (!%p434_p13), %s309_s29, 128  }
  0xad   : > { %672 = vsyncadd (!%p434_p13), %s309_s29, 4294967168  ;;  %s31_s10 = sadd.s32 1, %s707_s10   ;;  %s1090_s22 = sld [smem:[#allocation17_spill]] }
  0xae   : > { %p28_p3 = scmp.ge.s32.totalorder %s31_s10, 4   ;;  %s1091_s0 = smov %s679_s1 }
  0xaf   : > { %s1092_s1 = smov %s683_s30  ;;  %s1093_s30 = smov %s920_s24 }
  0xb0   : > { %s1094_s5 = smov %s691_s6  ;;  %s1095_s6 = smov %s695_s7 }
  0xb1   : > { %s1096_s7 = smov %s841_s21  ;;  %s1097_s8 = smov %s703_s9 }
  0xb2   :  { %30 = sbr.rel (!%p28_p3) target bundleno = 32 (0x20), region = 86 }
  0xb3   : > { %s1098_s9 = smov %s1090_s22 }
  0xb9   :  { %314 = vsyncpa [#allocation6], 1 }
  0xba   :  { %316 = vsyncpa [#allocation6 + $0x1], 1 }
  0xbb   :  { %317 = vsyncpa [#allocation9], 1 }
  0xbc   :  { %319 = vsyncpa [#allocation9 + $0x1], 1 }
  0xbd   :  { %320 = vsyncpa [#allocation7], 1 }
  0xbe   :  { %322 = vsyncpa [#allocation7 + $0x1], 1 }

</bundles_post_ra>
